<compile_context>
chip_gen: v6e
topology: v6e:2x2x1
jax: 0.10.0
libtpu: 0.0.40
codegen_flags: <defaults>
</compile_context>

<pallas_src>
import functools
import math

import jax
import jax.numpy as jnp
from jax import lax
from jax.experimental import pallas as pl
from jax.experimental.pallas import tpu as pltpu


_SQRT_HALF = 1.0 / math.sqrt(2.0)


def _erf_approx(x):
    # Abramowitz & Stegun 7.1.26 (|abs err| <= 1.5e-7) built from exp/mul/where
    # only, so it lowers cleanly in Mosaic.  Matches torch.nn.GELU() (exact,
    # erf-based) to well below f32 noise for these magnitudes.
    # TODO(synk): switch to lax.erf if/when Mosaic exposes a direct erf lowering.
    a1, a2, a3, a4, a5 = (0.254829592, -0.284496736, 1.421413741,
                          -1.453152027, 1.061405429)
    p = 0.3275911
    s = jnp.where(x >= 0, jnp.float32(1.0), jnp.float32(-1.0))
    ax = x * s
    t = 1.0 / (1.0 + p * ax)
    poly = ((((a5 * t + a4) * t + a3) * t + a2) * t + a1) * t
    return s * (1.0 - poly * jnp.exp(-ax * ax))


def _gelu_exact(x):
    return 0.5 * x * (1.0 + _erf_approx(x * _SQRT_HALF))


# ---------------------------------------------------------------------------
# Fused kernel: (optional LayerNorm) -> Linear -> GELU on one [TM, TN] tile.
# ---------------------------------------------------------------------------
def _intermediate_kernel(apply_ln, eps,
                         x_ref, g_ref, bta_ref, w_ref, b_ref, o_ref):
    x = x_ref[...].astype(jnp.float32)                       # [TM, H]
    if apply_ln:
        mean = jnp.mean(x, axis=-1, keepdims=True)
        xc = x - mean
        var = jnp.mean(xc * xc, axis=-1, keepdims=True)      # biased, like torch
        x = xc * lax.rsqrt(var + eps)                        # EUP rsqrt (no div)
        x = x * g_ref[...] + bta_ref[...]
    # MXU contraction over H, f32 accumulation.
    y = jnp.dot(x, w_ref[...].astype(jnp.float32),
                preferred_element_type=jnp.float32)          # [TM, TN]
    y = y + b_ref[...]
    o_ref[...] = _gelu_exact(y).astype(o_ref.dtype)


def _pick_tile(dim, target, align):
    """Largest `align`-multiple <= target that divides dim, else the full dim."""
    if dim <= target:
        return dim
    t = (target // align) * align
    while t >= align:
        if dim % t == 0:
            return t
        t -= align
    return dim


def fused_ln_dense_gelu(hidden_states, dense_w, dense_b,
                        ln_gamma=None, ln_beta=None, *,
                        post_ln=False, eps=1e-12,
                        row_tile=256, col_tile=512):
    """y = GELU((LN(x) if not post_ln else x) @ W + b), x: [..., H]."""
    orig_shape = hidden_states.shape
    H = orig_shape[-1]
    I = dense_w.shape[1]
    x2d = hidden_states.reshape(-1, H)
    N = x2d.shape[0]

    apply_ln = not post_ln
    if not apply_ln or ln_gamma is None:
        ln_gamma = jnp.ones((H,), dtype=jnp.float32)
        ln_beta = jnp.zeros((H,), dtype=jnp.float32)

    # Row tiling (sublane axis): multiple of 8; pad rows, slice afterwards.
    tm = min(row_tile, ((N + 7) // 8) * 8)
    tm = max(8, ((tm + 7) // 8) * 8)
    n_pad = ((N + tm - 1) // tm) * tm
    if n_pad != N:
        x2d = jnp.pad(x2d, ((0, n_pad - N), (0, 0)))

    # Column tiling (lane axis of the output): multiple of 128 or the full I.
    tn = _pick_tile(I, col_tile, 128)

    grid = (pl.cdiv(n_pad, tm), pl.cdiv(I, tn))
    kernel = functools.partial(_intermediate_kernel, apply_ln, float(eps))

    out = pl.pallas_call(
        kernel,
        out_shape=jax.ShapeDtypeStruct((n_pad, I), hidden_states.dtype),
        grid=grid,
        in_specs=[
            pl.BlockSpec((tm, H), lambda i, j: (i, 0)),      # activations
            pl.BlockSpec((1, H), lambda i, j: (0, 0)),       # LN gamma (resident)
            pl.BlockSpec((1, H), lambda i, j: (0, 0)),       # LN beta  (resident)
            pl.BlockSpec((H, tn), lambda i, j: (0, j)),      # weight column tile
            pl.BlockSpec((1, tn), lambda i, j: (0, j)),      # bias column tile
        ],
        out_specs=pl.BlockSpec((tm, tn), lambda i, j: (i, j)),
        compiler_params=pltpu.CompilerParams(
            dimension_semantics=("parallel", "parallel"),
            vmem_limit_bytes=48 * 1024 * 1024),
    )(x2d,
      ln_gamma.astype(jnp.float32).reshape(1, H),
      ln_beta.astype(jnp.float32).reshape(1, H),
      dense_w,
      dense_b.reshape(1, I))

    if n_pad != N:
        out = out[:N]
    return out.reshape(*orig_shape[:-1], I)


def graphormer_intermediate_forward(hidden_states, params, *,
                                    mode="2d", post_ln=False, eps=1e-12):
    """Mirrors GraphormerIntermediate.forward(hidden_states, mode)."""
    if post_ln:
        gamma = beta = None
    elif mode == "2d":
        gamma, beta = params["ln2d_gamma"], params["ln2d_beta"]
    elif mode == "3d":
        gamma, beta = params["ln3d_gamma"], params["ln3d_beta"]
    else:
        raise ValueError(f"unknown mode: {mode!r}")
    return fused_ln_dense_gelu(hidden_states, params["dense_w"],
                               params["dense_b"], gamma, beta,
                               post_ln=post_ln, eps=eps)


if __name__ == "__main__":
    key = jax.random.PRNGKey(0)
    B, S, H, I = 2, 8, 32, 128           # batch, seq, hidden, intermediate=4*H
    eps = 1e-12                          # config.layer_norm_eps

    k_x, k_w, k_g2, k_b2, k_g3, k_b3 = jax.random.split(key, 6)
    hidden_states = jax.random.normal(k_x, (B, S, H), dtype=jnp.float32)
    params = {
        "dense_w": 0.2 * jax.random.normal(k_w, (H, I), dtype=jnp.float32),
        "dense_b": jnp.zeros((I,), dtype=jnp.float32),
        "ln2d_gamma": 1.0 + 0.1 * jax.random.normal(k_g2, (H,), jnp.float32),
        "ln2d_beta": 0.1 * jax.random.normal(k_b2, (H,), jnp.float32),
        "ln3d_gamma": 1.0 + 0.1 * jax.random.normal(k_g3, (H,), jnp.float32),
        "ln3d_beta": 0.1 * jax.random.normal(k_b3, (H,), jnp.float32),
    }

    out = graphormer_intermediate_forward(hidden_states, params,
                                          mode="2d", post_ln=False, eps=eps)
    out = jax.block_until_ready(out)

    # Pure-JAX reference (pre-LN '2d' path) for a sanity check.
    def _ref(x):
        mean = x.mean(-1, keepdims=True)
        var = ((x - mean) ** 2).mean(-1, keepdims=True)
        xn = (x - mean) * lax.rsqrt(var + eps)
        xn = xn * params["ln2d_gamma"] + params["ln2d_beta"]
        y = xn @ params["dense_w"] + params["dense_b"]
        return jax.nn.gelu(y, approximate=False)

    ref = jax.block_until_ready(_ref(hidden_states))
    assert out.shape == (B, S, I)
    assert bool(jnp.allclose(out, ref, atol=1e-4, rtol=1e-4))
    print("KERNEL_OK")
</pallas_src>

<mosaic_0001>
module attributes {stable_mosaic.version = 11 : i64} {
  func.func @_intermediate_kernel(%arg0: i32, %arg1: i32, %arg2: memref<16x32xf32, #tpu.memory_space<vmem>>, %arg3: memref<1x32xf32, #tpu.memory_space<vmem>>, %arg4: memref<1x32xf32, #tpu.memory_space<vmem>>, %arg5: memref<32x128xf32, #tpu.memory_space<vmem>>, %arg6: memref<1x128xf32, #tpu.memory_space<vmem>>, %arg7: memref<16x128xf32, #tpu.memory_space<vmem>>) attributes {dimension_semantics = [#tpu.dimension_semantics<parallel>, #tpu.dimension_semantics<parallel>], iteration_bounds = array<i64: 1, 1>, scalar_prefetch = 0 : i64, scratch_operands = 0 : i64, tpu.core_type = #tpu.core_type<tc>, window_params = [{transform_indices = @transform_0, window_bounds = array<i64: 16, 32>}, {pipeline_mode = #tpu.pipeline_mode<synchronous>, transform_indices = @transform_1, window_bounds = array<i64: 1, 32>}, {pipeline_mode = #tpu.pipeline_mode<synchronous>, transform_indices = @transform_2, window_bounds = array<i64: 1, 32>}, {transform_indices = @transform_3, window_bounds = array<i64: 32, 128>}, {transform_indices = @transform_4, window_bounds = array<i64: 1, 128>}, {transform_indices = @transform_5, window_bounds = array<i64: 16, 128>}]} {
    %c0 = arith.constant 0 : index
    %c0_0 = arith.constant 0 : index
    %0 = vector.load %arg2[%c0, %c0_0] : memref<16x32xf32, #tpu.memory_space<vmem>>, vector<16x32xf32>
    %cst = arith.constant dense<0.000000e+00> : vector<16xf32>
    %1 = vector.multi_reduction <add>, %0, %cst [1] : vector<16x32xf32> to vector<16xf32>
    %2 = vector.shape_cast %1 : vector<16xf32> to vector<16x1xf32>
    %cst_1 = arith.constant 3.200000e+01 : f32
    %3 = vector.broadcast %cst_1 : f32 to vector<16x1xf32>
    %4 = arith.divf %2, %3 : vector<16x1xf32>
    %5 = vector.broadcast %4 : vector<16x1xf32> to vector<16x32xf32>
    %6 = arith.subf %0, %5 : vector<16x32xf32>
    %7 = arith.mulf %6, %6 : vector<16x32xf32>
    %cst_2 = arith.constant dense<0.000000e+00> : vector<16xf32>
    %8 = vector.multi_reduction <add>, %7, %cst_2 [1] : vector<16x32xf32> to vector<16xf32>
    %9 = vector.shape_cast %8 : vector<16xf32> to vector<16x1xf32>
    %cst_3 = arith.constant 3.200000e+01 : f32
    %10 = vector.broadcast %cst_3 : f32 to vector<16x1xf32>
    %11 = arith.divf %9, %10 : vector<16x1xf32>
    %cst_4 = arith.constant 9.99999996E-13 : f32
    %12 = vector.broadcast %cst_4 : f32 to vector<16x1xf32>
    %13 = arith.addf %11, %12 : vector<16x1xf32>
    %14 = math.rsqrt %13 : vector<16x1xf32>
    %15 = vector.broadcast %14 : vector<16x1xf32> to vector<16x32xf32>
    %16 = arith.mulf %6, %15 : vector<16x32xf32>
    %c0_5 = arith.constant 0 : index
    %c0_6 = arith.constant 0 : index
    %17 = vector.load %arg3[%c0_5, %c0_6] : memref<1x32xf32, #tpu.memory_space<vmem>>, vector<1x32xf32>
    %18 = vector.broadcast %17 : vector<1x32xf32> to vector<16x32xf32>
    %19 = arith.mulf %16, %18 : vector<16x32xf32>
    %c0_7 = arith.constant 0 : index
    %c0_8 = arith.constant 0 : index
    %20 = vector.load %arg4[%c0_7, %c0_8] : memref<1x32xf32, #tpu.memory_space<vmem>>, vector<1x32xf32>
    %21 = vector.broadcast %20 : vector<1x32xf32> to vector<16x32xf32>
    %22 = arith.addf %19, %21 : vector<16x32xf32>
    %c0_9 = arith.constant 0 : index
    %c0_10 = arith.constant 0 : index
    %23 = vector.load %arg5[%c0_9, %c0_10] : memref<32x128xf32, #tpu.memory_space<vmem>>, vector<32x128xf32>
    %cst_11 = arith.constant dense<0.000000e+00> : vector<16x128xf32>
    %24 = tpu.matmul %22, %23, %cst_11 {dimension_numbers = #tpu.dot_dimension_numbers<[1], [0], [0], [1], [0, 0, 1, 1], [], []>} : vector<16x32xf32>, vector<32x128xf32>, vector<16x128xf32> -> vector<16x128xf32>
    %c0_12 = arith.constant 0 : index
    %c0_13 = arith.constant 0 : index
    %25 = vector.load %arg6[%c0_12, %c0_13] : memref<1x128xf32, #tpu.memory_space<vmem>>, vector<1x128xf32>
    %26 = vector.broadcast %25 : vector<1x128xf32> to vector<16x128xf32>
    %27 = arith.addf %24, %26 : vector<16x128xf32>
    %cst_14 = arith.constant 5.000000e-01 : f32
    %28 = vector.broadcast %cst_14 : f32 to vector<16x128xf32>
    %29 = arith.mulf %28, %27 : vector<16x128xf32>
    %cst_15 = arith.constant 0.707106769 : f32
    %30 = vector.broadcast %cst_15 : f32 to vector<16x128xf32>
    %31 = arith.mulf %27, %30 : vector<16x128xf32>
    %cst_16 = arith.constant 0.000000e+00 : f32
    %32 = vector.broadcast %cst_16 : f32 to vector<16x128xf32>
    %33 = arith.cmpf oge, %31, %32 : vector<16x128xf32>
    %cst_17 = arith.constant 1.000000e+00 : f32
    %cst_18 = arith.constant -1.000000e+00 : f32
    %34 = vector.broadcast %cst_17 : f32 to vector<16x128xf32>
    %35 = vector.broadcast %cst_18 : f32 to vector<16x128xf32>
    %36 = arith.select %33, %34, %35 : vector<16x128xi1>, vector<16x128xf32>
    %37 = arith.mulf %31, %36 : vector<16x128xf32>
    %cst_19 = arith.constant 0.327591091 : f32
    %38 = vector.broadcast %cst_19 : f32 to vector<16x128xf32>
    %39 = arith.mulf %38, %37 : vector<16x128xf32>
    %cst_20 = arith.constant 1.000000e+00 : f32
    %40 = vector.broadcast %cst_20 : f32 to vector<16x128xf32>
    %41 = arith.addf %40, %39 : vector<16x128xf32>
    %cst_21 = arith.constant 1.000000e+00 : f32
    %42 = vector.broadcast %cst_21 : f32 to vector<16x128xf32>
    %43 = arith.divf %42, %41 : vector<16x128xf32>
    %cst_22 = arith.constant 1.06140542 : f32
    %44 = vector.broadcast %cst_22 : f32 to vector<16x128xf32>
    %45 = arith.mulf %44, %43 : vector<16x128xf32>
    %cst_23 = arith.constant -1.45315206 : f32
    %46 = vector.broadcast %cst_23 : f32 to vector<16x128xf32>
    %47 = arith.addf %45, %46 : vector<16x128xf32>
    %48 = arith.mulf %47, %43 : vector<16x128xf32>
    %cst_24 = arith.constant 1.42141378 : f32
    %49 = vector.broadcast %cst_24 : f32 to vector<16x128xf32>
    %50 = arith.addf %48, %49 : vector<16x128xf32>
    %51 = arith.mulf %50, %43 : vector<16x128xf32>
    %cst_25 = arith.constant -0.284496725 : f32
    %52 = vector.broadcast %cst_25 : f32 to vector<16x128xf32>
    %53 = arith.addf %51, %52 : vector<16x128xf32>
    %54 = arith.mulf %53, %43 : vector<16x128xf32>
    %cst_26 = arith.constant 0.254829586 : f32
    %55 = vector.broadcast %cst_26 : f32 to vector<16x128xf32>
    %56 = arith.addf %54, %55 : vector<16x128xf32>
    %57 = arith.mulf %56, %43 : vector<16x128xf32>
    %cst_27 = arith.constant 0.000000e+00 : f32
    %58 = vector.broadcast %cst_27 : f32 to vector<16x128xf32>
    %59 = arith.subf %58, %37 : vector<16x128xf32>
    %60 = arith.mulf %59, %37 : vector<16x128xf32>
    %61 = math.exp %60 : vector<16x128xf32>
    %62 = arith.mulf %57, %61 : vector<16x128xf32>
    %cst_28 = arith.constant 1.000000e+00 : f32
    %63 = vector.broadcast %cst_28 : f32 to vector<16x128xf32>
    %64 = arith.subf %63, %62 : vector<16x128xf32>
    %65 = arith.mulf %36, %64 : vector<16x128xf32>
    %cst_29 = arith.constant 1.000000e+00 : f32
    %66 = vector.broadcast %cst_29 : f32 to vector<16x128xf32>
    %67 = arith.addf %66, %65 : vector<16x128xf32>
    %68 = arith.mulf %29, %67 : vector<16x128xf32>
    %c0_30 = arith.constant 0 : index
    %c0_31 = arith.constant 0 : index
    %69 = vector.load %arg7[%c0_30, %c0_31] : memref<16x128xf32, #tpu.memory_space<vmem>>, vector<16x128xf32>
    tpu.vector_store %arg7[%c0_30, %c0_31], %68 {strides = array<i32>} : memref<16x128xf32, #tpu.memory_space<vmem>>, vector<16x128xf32>,
    return
  }
  func.func @transform_0(%arg0: i32, %arg1: i32) -> (i32, i32) {
    %c0_i32 = arith.constant 0 : i32
    %c0_i32_0 = arith.constant 0 : i32
    return %arg0, %c0_i32 : i32, i32
  }
  func.func @transform_1(%arg0: i32, %arg1: i32) -> (i32, i32) {
    %c0_i32 = arith.constant 0 : i32
    %c0_i32_0 = arith.constant 0 : i32
    %c0_i32_1 = arith.constant 0 : i32
    return %c0_i32, %c0_i32_0 : i32, i32
  }
  func.func @transform_2(%arg0: i32, %arg1: i32) -> (i32, i32) {
    %c0_i32 = arith.constant 0 : i32
    %c0_i32_0 = arith.constant 0 : i32
    %c0_i32_1 = arith.constant 0 : i32
    return %c0_i32, %c0_i32_0 : i32, i32
  }
  func.func @transform_3(%arg0: i32, %arg1: i32) -> (i32, i32) {
    %c0_i32 = arith.constant 0 : i32
    %c0_i32_0 = arith.constant 0 : i32
    return %c0_i32, %arg1 : i32, i32
  }
  func.func @transform_4(%arg0: i32, %arg1: i32) -> (i32, i32) {
    %c0_i32 = arith.constant 0 : i32
    %c0_i32_0 = arith.constant 0 : i32
    return %c0_i32, %arg1 : i32, i32
  }
  func.func @transform_5(%arg0: i32, %arg1: i32) -> (i32, i32) {
    %c0_i32 = arith.constant 0 : i32
    return %arg0, %arg1 : i32, i32
  }
}

</mosaic_0001>

<bundles_post_ra>
// kernel: tpu_custom_call.1
= control target key start
LH: loop header
LB: loop body
LE: loop exit
PB: predicated region body
PF: predicated region fallthrough
CT: control target
= control target key end

     0   :  { %10 = vsyncpa [#allocation3], 0  ;;  %s438_s0 = inlined_call_operand.hbm [shape: f32[16,32], index: 0, kind: input, shape index: {}]   ;;  %s439_s1 = inlined_call_operand.vmem [shape: f32[1,32], index: 1, kind: input, shape index: {}]   ;;  %s440_s2 = inlined_call_operand.vmem [shape: f32[1,32], index: 2, kind: input, shape index: {}]   ;;  %s441_s3 = inlined_call_operand.hbm [shape: f32[32,128], index: 3, kind: input, shape index: {}]   ;;  %s442_s4 = inlined_call_operand.vmem [shape: f32[1,128], index: 4, kind: input, shape index: {}]   ;;  %s443_s5 = inlined_call_operand.hbm [shape: f32[16,128], index: 5, kind: output, shape index: {}]  }
   0x1   :  { %11 = vsyncpa [#allocation6], 0 }
   0x2   :  { %12 = vsyncpa [#allocation4], 0  ;;  %s369_s18 = smov [#allocation2]  }
   0x3   :  { %s18_s19 = sshll.u32 %s369_s18, 4  ;;  %s19_s19 = int_to_ptr.vmem [resolvable:$true] %s18_s19 }
   0x4   :  { %s311_s20 = scalar_lea.vmem %s19_s19, 256  ;;  %p316_p1 = scmp.lt.s32.totalorder %s19_s19, %s19_s19 }
   0x5   :  { %p312_p0 = scmp.ne.s32.totalorder %s19_s19, %s311_s20  ;;  %p317_p2 = scmp.lt.s32.totalorder %s311_s20, %s311_s20 }
   0x7   :  { %p318_p3 = por %p317_p2, %p316_p1 }
   0x9   :  { %p319_p4 = pnand %p318_p3, %p312_p0 }
   0xb   :  { %322 = shalt.err (!%p319_p4)
}
   0xc   :  { %s370_s21 = smov 128   ;;  %s371_s22 = smov 8  }
   0xd   :  { %24 = dma.hbm_to_vmem [thread:$0]  %s438_s0, 256, %s19_s19, [#allocation3], %s370_s21, %s370_s21, %s371_s22  }
   0xe   :  { %s372_s25 = smov [#allocation5]  }
   0xf   :  { %s34_s26 = sshll.u32 %s372_s25, 4  ;;  %s35_s26 = int_to_ptr.vmem [resolvable:$true] %s34_s26 }
  0x10   :  { %s331_s27 = scalar_lea.vmem %s35_s26, 512  ;;  %p336_p6 = scmp.lt.s32.totalorder %s35_s26, %s35_s26 }
  0x11   :  { %p332_p5 = scmp.ne.s32.totalorder %s35_s26, %s331_s27  ;;  %p337_p7 = scmp.lt.s32.totalorder %s331_s27, %s331_s27 }
  0x13   :  { %p338_p8 = por %p337_p7, %p336_p6 }
  0x15   :  { %p339_p9 = pnand %p338_p8, %p332_p5 }
  0x17   :  { %342 = shalt.err (!%p339_p9)
}
  0x18   :  { %40 = dma.hbm_to_vmem [thread:$0]  %s441_s3, 512, %s35_s26, [#allocation6], %s370_s21, %s370_s21, %s371_s22  }
  0x19   :  { %363 = dma.done.wait [#allocation3], 256  }
  0x1a   :  { %364 = vsyncadd [#allocation3], 4294967040 }
  0x1b   :  { %365 = dma.done.wait [#allocation6], 512  }
  0x1c   :  { %366 = vsyncadd [#allocation6], 4294966784  ;;  %vm51_vm0 = vcmask 261120   ;;  %v49_v0 = vld [vmem:[#allocation2] sm:$0xff]  ;;  %v50_v1 = vld [vmem:[#allocation2 + $0x8] sm:$0xff]  ;;  %v373_v41 = vmov -1.0  }
  0x1d   :  { %v52_v2 = vsel %vm51_vm0, %v49_v0, 0.0  ;;  %v55_v3 = vsel %vm51_vm0, %v50_v1, 0.0  ;;  %v100_v14 = vld [vmem:[#allocation5 + $0x18] sm:$0xff]  ;;  %v99_v15 = vld [vmem:[#allocation5 + $0x10] sm:$0xff]  ;;  %v98_v16 = vld [vmem:[#allocation5 + $0x8] sm:$0xff] }
  0x1e   :  { %53 = vadd.xlane.f32.xlu0 %v52_v2  ;;  %274 = vmatprep.subr.mxu0 %v100_v14  ;;  %v97_v17 = vld [vmem:[#allocation5] sm:$0xff]  ;;  %v263_v25 = vld [vmem:[%s439_s1] ss:$0 sm:$0xff]  ;;  %s374_s1 = smov [#allocation7]  }
  0x1f   :  { %275 = vmatpush3.msra.mxu0 %v100_v14  ;;  %v264_v27 = vld [vmem:[%s440_s2] ss:$0 sm:$0xff]  ;;  %s250_s2 = sshll.u32 %s374_s1, 4  ;;  %s251_s2 = int_to_ptr.vmem [resolvable:$true] %s250_s2 }
  0x20   :  { %276 = vmatprep.subr.mxu0 %v99_v15  ;;  %v265_v34 = vld [vmem:[%s442_s4] ss:$0 sm:$0xff]  ;;  %s343_s4 = scalar_lea.vmem %s251_s2, 256  ;;  %p348_p11 = scmp.lt.s32.totalorder %s251_s2, %s251_s2 }
  0x21   :  { %277 = vmatpush3.msra.mxu0 %v99_v15  ;;  %p344_p10 = scmp.ne.s32.totalorder %s251_s2, %s343_s4  ;;  %p349_p12 = scmp.lt.s32.totalorder %s343_s4, %s343_s4 }
  0x22   :  { %56 = vadd.xlane.f32.xlu0 %v55_v3  ;;  %278 = vmatprep.subr.mxu0 %v98_v16 }
  0x23   :  { %279 = vmatpush3.msra.mxu0 %v98_v16  ;;  %p350_p13 = por %p349_p12, %p348_p11 }
  0x24   :  { %280 = vmatprep.subr.mxu0 %v97_v17 }
  0x25   :  { %281 = vmatpush3.msra.mxu0 %v97_v17  ;;  %p351_p0 = pnand %p350_p13, %p344_p10 }
  0xa7   :  { %v54_v4 = vpop.xlane.xlu0 %53 }
  0xa8   :  { %v59_v5 = vmul.f32 0.03125, %v54_v4 }
  0xaa   :  { %v61_v6 = vsub.f32 %v49_v0, %v59_v5 }
  0xab   :  { %v57_v7 = vpop.xlane.xlu0 %56 }
  0xac   :  { %v60_v8 = vmul.f32 0.03125, %v57_v7  ;;  %v63_v9 = vmul.f32 %v61_v6, %v61_v6 }
  0xae   :  { %v62_v10 = vsub.f32 %v50_v1, %v60_v8  ;;  %v65_v11 = vsel %vm51_vm0, %v63_v9, 0.0 }
  0xaf   :  { %66 = vadd.xlane.f32.xlu1 %v65_v11 }
  0xb0   :  { %v64_v12 = vmul.f32 %v62_v10, %v62_v10 }
  0xb2   :  { %v68_v13 = vsel %vm51_vm0, %v64_v12, 0.0 }
  0xb3   :  { %69 = vadd.xlane.f32.xlu1 %v68_v13 }
 0x138   :  { %v67_v18 = vpop.xlane.xlu1 %66 }
 0x139   :  { %v71_v19 = vmul.f32 0.03125, %v67_v18 }
 0x13b   :  { %v73_v20 = vadd.f32 1e-12, %v71_v19 }
 0x13c   :  { %v70_v21 = vpop.xlane.xlu1 %69 }
 0x13d   :  { %291 = vrsqrt.f32 %v73_v20  ;;  %v72_v22 = vmul.f32 0.03125, %v70_v21 }
 0x13f   :  { %v74_v23 = vadd.f32 1e-12, %v72_v22 }
 0x141   :  { %293 = vrsqrt.f32 %v74_v23 }
 0x14a   :  { %v292_v24 = vpop.eup %291 }
 0x14b   :  { %v77_v26 = vmul.f32 %v292_v24, %v61_v6 }
 0x14d   :  { %v86_v28 = vmul.f32 %v263_v25, %v77_v26 }
 0x14e   :  { %v294_v29 = vpop.eup %293 }
 0x14f   :  { %v78_v30 = vmul.f32 %v294_v29, %v62_v10  ;;  %v95_v31 = vadd.f32 %v264_v27, %v86_v28 }
 0x151   :  { %v87_v32 = vmul.f32 %v263_v25, %v78_v30  ;;  %282 = vmatprep.mubr.msk.f32.mxu0 %vm51_vm0, %v95_v31 }
 0x153   :  { %v96_v33 = vadd.f32 %v264_v27, %v87_v32 }
 0x155   :  { %283 = vmatmul.mubr.msk.f32.vlgmr.msra.gmra.mxu0 %vm51_vm0, %v96_v33 }
 0x215   :  { %v284_v35 = vpop.f32.mrf.mxu0 }
 0x216   :  { %v186_v36 = vadd.f32 %v284_v35, %v265_v34 }
 0x217   :  { %v180_v37 = vpop.f32.mrf.mxu0 }
 0x218   :  { %v192_v38 = vmul.f32 0.70710677, %v186_v36  ;;  %v181_v39 = vadd.f32 %v265_v34, %v180_v37  ;;  %v190_v19 = vmul.f32 0.5, %v186_v36 }
 0x21a   :  { %vm194_vm1 = vcmp.ge.f32.partialorder %v192_v38, 0.0  ;;  %v191_v40 = vmul.f32 0.70710677, %v181_v39  ;;  %v189_v23 = vmul.f32 0.5, %v181_v39 }
 0x21b   :  { %v196_v42 = vsel %vm194_vm1, 1.0, %v373_v41 }
 0x21c   :  { %v198_v43 = vmul.f32 %v196_v42, %v192_v38  ;;  %vm193_vm2 = vcmp.ge.f32.partialorder %v191_v40, 0.0 }
 0x21d   :  { %v195_v44 = vsel %vm193_vm2, 1.0, %v373_v41 }
 0x21e   :  { %v200_v45 = vmul.f32 0.3275911, %v198_v43  ;;  %v197_v46 = vmul.f32 %v195_v44, %v191_v40  ;;  %v226_v50 = vsub.f32 0.0, %v198_v43 }
 0x220   :  { %v202_v47 = vadd.f32 1.0, %v200_v45  ;;  %v199_v48 = vmul.f32 0.3275911, %v197_v46  ;;  %v225_v51 = vsub.f32 0.0, %v197_v46  ;;  %v228_v52 = vmul.f32 %v226_v50, %v198_v43 }
 0x222   :  { %295 = vrcp.f32 %v202_v47  ;;  %v201_v49 = vadd.f32 1.0, %v199_v48  ;;  %v227_v54 = vmul.f32 %v225_v51, %v197_v46  ;;  %v231_v56 = vmul.f32 1.442695, %v228_v52 }
 0x224   :  { %297 = vrcp.f32 %v201_v49  ;;  %v229_v60 = vmul.f32 1.442695, %v227_v54 }
 0x225   :  { %299 = vpow2.f32 %v231_v56 }
 0x226   :  { %301 = vpow2.f32 %v229_v60 }
 0x22f   :  { %v296_v53 = vpop.eup %295 }
 0x230   :  { %v208_v55 = vmul.f32 1.0614054, %v296_v53 }
 0x231   :  { %v298_v57 = vpop.eup %297 }
 0x232   :  { %v210_v58 = vadd.f32 -1.4531521, %v208_v55  ;;  %v207_v59 = vmul.f32 1.0614054, %v298_v57  ;;  %v300_v10 = vpop.eup %299 }
 0x233   :  { %v302_v14 = vpop.eup %301 }
 0x234   :  { %v212_v61 = vmul.f32 %v296_v53, %v210_v58  ;;  %v209_v62 = vadd.f32 -1.4531521, %v207_v59 }
 0x236   :  { %v214_v63 = vadd.f32 1.4214138, %v212_v61  ;;  %v211_v0 = vmul.f32 %v298_v57, %v209_v62 }
 0x238   :  { %v216_v1 = vmul.f32 %v296_v53, %v214_v63  ;;  %v213_v2 = vadd.f32 1.4214138, %v211_v0 }
 0x23a   :  { %v218_v3 = vadd.f32 -0.28449672, %v216_v1  ;;  %v215_v4 = vmul.f32 %v298_v57, %v213_v2 }
 0x23c   :  { %v220_v5 = vmul.f32 %v296_v53, %v218_v3  ;;  %v217_v6 = vadd.f32 -0.28449672, %v215_v4 }
 0x23e   :  { %v222_v7 = vadd.f32 0.2548296, %v220_v5  ;;  %v219_v8 = vmul.f32 %v298_v57, %v217_v6 }
 0x240   :  { %v224_v9 = vmul.f32 %v296_v53, %v222_v7  ;;  %v221_v11 = vadd.f32 0.2548296, %v219_v8 }
 0x242   :  { %v234_v12 = vmul.f32 %v300_v10, %v224_v9  ;;  %v223_v13 = vmul.f32 %v298_v57, %v221_v11 }
 0x244   :  { %v236_v15 = vsub.f32 1.0, %v234_v12  ;;  %v233_v16 = vmul.f32 %v302_v14, %v223_v13 }
 0x246   :  { %v238_v17 = vmul.f32 %v236_v15, %v196_v42  ;;  %v235_v18 = vsub.f32 1.0, %v233_v16 }
 0x248   :  { %v240_v20 = vadd.f32 1.0, %v238_v17  ;;  %v237_v21 = vmul.f32 %v235_v18, %v195_v44 }
 0x24a   :  { %v242_v22 = vmul.f32 %v240_v20, %v190_v19  ;;  %v239_v24 = vadd.f32 1.0, %v237_v21 }
 0x24c   :  { %244 = vst [vmem:[#allocation7 + $0x8] sm:$0xff] %v242_v22  ;;  %v241_v25 = vmul.f32 %v239_v24, %v189_v23 }
 0x24e   :  { %243 = vst [vmem:[#allocation7] sm:$0xff] %v241_v25 }
 0x24f   :  { %354 = shalt.err (!%p351_p0)
}
 0x250   :  { %256 = dma.vmem_to_hbm [thread:$0]  %s251_s2, 256, %s443_s5, [#allocation4], %s370_s21, %s370_s21, %s371_s22  }
 0x251   :  { %367 = dma.done.wait [#allocation4], 256  }
 0x252   :  { %368 = vsyncadd [#allocation4], 4294967040 }
 0x253   :  { %260 = vsyncpa [#allocation3], 1 }
 0x254   :  { %261 = vsyncpa [#allocation6], 1 }
 0x255   :  { %262 = vsyncpa [#allocation4], 1 }

</bundles_post_ra>
